<compile_context>
chip_gen: v7x
topology: tpu7x:2x2x1
jax: 0.10.0
libtpu: 0.0.40
codegen_flags: <defaults>
</compile_context>

<pallas_src>
import functools
import math

import jax
import jax.numpy as jnp
import numpy as np
from jax.experimental import pallas as pl
from jax.experimental.pallas import tpu as pltpu

T_BLOCK = 8   # timesteps per sequential grid step (multiple of 8, sublane aligned)


# ------------------------------- small helpers --------------------------------
@functools.lru_cache(maxsize=1)
def _vmem_limit_bytes():
    """~75% of physical VMEM (96 MiB v5e/v6e, 48 MiB v7x); safe fallback 48 MiB."""
    try:
        cap = int(pltpu.get_tpu_info().vmem_capacity_bytes)
    except Exception:
        cap = 64 * 1024 * 1024
    return max(32 * 1024 * 1024, (cap * 3) // 4)


def _m_tile(m):
    """M tile for the flattened gi matmul (fat MXU tiles, divides m)."""
    if m <= 512:
        return m
    for c in (512, 256, 128, 64, 32, 16, 8):
        if m % c == 0:
            return c
    return m


def _scan_batch_tile(b):
    """Batch tile for the scan: divides b, keeps the lengths block sublane
    aligned (multiple of 8 unless it covers the whole batch), and yields >=2
    tiles so the parallel batch axis can be sharded over v7x's two TCs."""
    for cand in (64, 32, 16, 8):
        if b % cand == 0 and b // cand >= 2:
            return cand
    return b


def _divisor_leq(n, cap):
    best = 1
    for c in range(1, min(n, cap) + 1):
        if n % c == 0:
            best = c
    return best


# ------------------ hoisted input->hidden projection (bf16 MXU) ---------------
def _gi_kernel(x_ref, w_ref, b_ref, o_ref):
    x = x_ref[...].astype(jnp.bfloat16)
    o_ref[...] = (jnp.dot(x, w_ref[...], preferred_element_type=jnp.float32)
                  + b_ref[...]).astype(o_ref.dtype)


def _gi_bidir_kernel(x_ref, wf_ref, bf_ref, wb_ref, bb_ref, of_ref, ob_ref):
    x = x_ref[...].astype(jnp.bfloat16)          # read x once for both dirs
    of_ref[...] = (jnp.dot(x, wf_ref[...], preferred_element_type=jnp.float32)
                   + bf_ref[...]).astype(of_ref.dtype)
    ob_ref[...] = (jnp.dot(x, wb_ref[...], preferred_element_type=jnp.float32)
                   + bb_ref[...]).astype(ob_ref.dtype)


def gi_pallas(x2d, w_ih_t, b_ih):
    """(M, D) @ (D, 3H) + (1, 3H) -> (M, 3H) bf16."""
    M, D = x2d.shape
    G = w_ih_t.shape[1]
    tm = _m_tile(M)
    return pl.pallas_call(
        _gi_kernel,
        out_shape=jax.ShapeDtypeStruct((M, G), jnp.bfloat16),
        grid=(M // tm,),
        in_specs=[pl.BlockSpec((tm, D), lambda i: (i, 0)),
                  pl.BlockSpec((D, G), lambda i: (0, 0)),
                  pl.BlockSpec((1, G), lambda i: (0, 0))],
        out_specs=pl.BlockSpec((tm, G), lambda i: (i, 0)),
        compiler_params=pltpu.CompilerParams(
            dimension_semantics=("parallel",),
            vmem_limit_bytes=_vmem_limit_bytes()),
    )(x2d, w_ih_t, b_ih)


def gi_bidir_pallas(x2d, wf_ih_t, bf_ih, wb_ih_t, bb_ih):
    """Both Bi-GRU directions' input projections off one pass over x."""
    M, D = x2d.shape
    G = wf_ih_t.shape[1]
    tm = _m_tile(M)
    return pl.pallas_call(
        _gi_bidir_kernel,
        out_shape=(jax.ShapeDtypeStruct((M, G), jnp.bfloat16),
                   jax.ShapeDtypeStruct((M, G), jnp.bfloat16)),
        grid=(M // tm,),
        in_specs=[pl.BlockSpec((tm, D), lambda i: (i, 0)),
                  pl.BlockSpec((D, G), lambda i: (0, 0)),
                  pl.BlockSpec((1, G), lambda i: (0, 0)),
                  pl.BlockSpec((D, G), lambda i: (0, 0)),
                  pl.BlockSpec((1, G), lambda i: (0, 0))],
        out_specs=[pl.BlockSpec((tm, G), lambda i: (i, 0)),
                   pl.BlockSpec((tm, G), lambda i: (i, 0))],
        compiler_params=pltpu.CompilerParams(
            dimension_semantics=("parallel",),
            vmem_limit_bytes=_vmem_limit_bytes()),
    )(x2d, wf_ih_t, bf_ih, wb_ih_t, bb_ih)


# ----------------------- sequential GRU recurrence kernels --------------------
def _gru_block_steps(gi_blk, lengths, whh, bhh, h, t_base, t_block, hidden,
                     reverse):
    """Run t_block GRU steps over one time block (all on values in vregs).
       gi_blk  (Bt, t_block, 3H)  precomputed x @ W_ih^T + b_ih (bf16)
       lengths (Bt, 1) int32      sequence lengths
       whh     (H, 3H) bf16       b_hh (1, 3H) f32
       h       (Bt, H) f32        recurrent state
    PyTorch gate order along 3H is [r | z | n].
    Returns (out_blk (Bt, t_block, H) f32, h (Bt, H) f32)."""
    outs = [None] * t_block
    steps = range(t_block - 1, -1, -1) if reverse else range(t_block)
    for tt in steps:                     # static -> fully unrolled
        t = t_base + tt
        gi = gi_blk[:, tt, :].astype(jnp.float32)
        gh = jnp.dot(h.astype(whh.dtype), whh,
                     preferred_element_type=jnp.float32) + bhh
        r = jax.nn.sigmoid(gi[:, :hidden] + gh[:, :hidden])
        z = jax.nn.sigmoid(gi[:, hidden:2 * hidden] + gh[:, hidden:2 * hidden])
        n = jnp.tanh(gi[:, 2 * hidden:] + r * gh[:, 2 * hidden:])
        h_new = (1.0 - z) * n + z * h
        # pack_padded_sequence semantics: padded steps are exact state no-ops
        # and pad_packed_sequence fills their outputs with zeros.
        valid = t < lengths              # (Bt, 1) bool
        h = jnp.where(valid, h_new, h)
        outs[tt] = jnp.where(valid, h_new, 0.0)
    return jnp.stack(outs, axis=1), h    # one dense (Bt, t_block, H) value


def _gru_scan_bidir_kernel(gi_f_ref, gi_b_ref, len_ref,
                           whh_f_ref, bhh_f_ref, whh_b_ref, bhh_b_ref,
                           out_f_ref, out_b_ref, hf_ref, hb_ref,
                           *, t_block, hidden, n_blocks):
    blk = pl.program_id(1)

    @pl.when(blk == 0)
    def _():
        hf_ref[...] = jnp.zeros_like(hf_ref)
        hb_ref[...] = jnp.zeros_like(hb_ref)

    lengths = len_ref[...]
    # forward direction walks time block `blk`
    out_f, hf = _gru_block_steps(gi_f_ref[...], lengths, whh_f_ref[...],
                                 bhh_f_ref[...], hf_ref[...],
                                 blk * t_block, t_block, hidden, reverse=False)
    # backward direction walks time block n_blocks-1-blk, timesteps reversed
    out_b, hb = _gru_block_steps(gi_b_ref[...], lengths, whh_b_ref[...],
                                 bhh_b_ref[...], hb_ref[...],
                                 (n_blocks - 1 - blk) * t_block,
                                 t_block, hidden, reverse=True)
    out_f_ref[...] = out_f.astype(out_f_ref.dtype)
    out_b_ref[...] = out_b.astype(out_b_ref.dtype)
    hf_ref[...] = hf
    hb_ref[...] = hb


def _gru_scan_kernel(gi_ref, len_ref, whh_ref, bhh_ref, out_ref, h_ref,
                     *, t_block, hidden, n_blocks, reverse):
    blk = pl.program_id(1)

    @pl.when(blk == 0)
    def _():
        h_ref[...] = jnp.zeros_like(h_ref)

    t_blk = (n_blocks - 1 - blk) if reverse else blk
    out_blk, h = _gru_block_steps(gi_ref[...], len_ref[...], whh_ref[...],
                                  bhh_ref[...], h_ref[...],
                                  t_blk * t_block, t_block, hidden, reverse)
    out_ref[...] = out_blk.astype(out_ref.dtype)
    h_ref[...] = h


def gru_bidir_scan_pallas(gi_f, gi_b, lengths2d, whh_f, bhh_f, whh_b, bhh_b,
                          *, t_block=T_BLOCK):
    B, L_pad, G = gi_f.shape
    H = whh_f.shape[0]
    nb = L_pad // t_block
    bt = _scan_batch_tile(B)
    fwd = lambda b, i: (b, i, 0)
    bwd = lambda b, i: (b, nb - 1 - i, 0)
    kernel = functools.partial(_gru_scan_bidir_kernel, t_block=t_block,
                               hidden=H, n_blocks=nb)
    return pl.pallas_call(
        kernel,
        out_shape=(jax.ShapeDtypeStruct((B, L_pad, H), jnp.bfloat16),
                   jax.ShapeDtypeStruct((B, L_pad, H), jnp.bfloat16)),
        grid=(B // bt, nb),
        in_specs=[
            pl.BlockSpec((bt, t_block, G), fwd),
            pl.BlockSpec((bt, t_block, G), bwd),
            pl.BlockSpec((bt, 1), lambda b, i: (b, 0)),
            pl.BlockSpec((H, G), lambda b, i: (0, 0)),
            pl.BlockSpec((1, G), lambda b, i: (0, 0)),
            pl.BlockSpec((H, G), lambda b, i: (0, 0)),
            pl.BlockSpec((1, G), lambda b, i: (0, 0)),
        ],
        out_specs=[pl.BlockSpec((bt, t_block, H), fwd),
                   pl.BlockSpec((bt, t_block, H), bwd)],
        scratch_shapes=[pltpu.VMEM((bt, H), jnp.float32),
                        pltpu.VMEM((bt, H), jnp.float32)],
        compiler_params=pltpu.CompilerParams(
            dimension_semantics=("parallel", "arbitrary"),
            vmem_limit_bytes=_vmem_limit_bytes()),
    )(gi_f, gi_b, lengths2d, whh_f, bhh_f, whh_b, bhh_b)


def gru_scan_pallas(gi, lengths2d, whh_t, bhh, *, reverse, t_block=T_BLOCK):
    B, L_pad, G = gi.shape
    H = whh_t.shape[0]
    nb = L_pad // t_block
    bt = _scan_batch_tile(B)
    if reverse:
        tmap = lambda b, i: (b, nb - 1 - i, 0)
    else:
        tmap = lambda b, i: (b, i, 0)
    kernel = functools.partial(_gru_scan_kernel, t_block=t_block, hidden=H,
                               n_blocks=nb, reverse=reverse)
    return pl.pallas_call(
        kernel,
        out_shape=jax.ShapeDtypeStruct((B, L_pad, H), jnp.bfloat16),
        grid=(B // bt, nb),
        in_specs=[
            pl.BlockSpec((bt, t_block, G), tmap),
            pl.BlockSpec((bt, 1), lambda b, i: (b, 0)),
            pl.BlockSpec((H, G), lambda b, i: (0, 0)),
            pl.BlockSpec((1, G), lambda b, i: (0, 0)),
        ],
        out_specs=pl.BlockSpec((bt, t_block, H), tmap),
        scratch_shapes=[pltpu.VMEM((bt, H), jnp.float32)],
        compiler_params=pltpu.CompilerParams(
            dimension_semantics=("parallel", "arbitrary"),
            vmem_limit_bytes=_vmem_limit_bytes()),
    )(gi, lengths2d, whh_t, bhh)


# --------------- finalize: avg directions + l2norm (no XLA concat) ------------
def _finalize_bi_kernel(f_ref, b_ref, o_ref, *, seq_len, txtnorm):
    x = (f_ref[:, :seq_len, :].astype(jnp.float32)
         + b_ref[:, :seq_len, :].astype(jnp.float32)) * 0.5
    if txtnorm:
        norm = jnp.sqrt(jnp.sum(x * x, axis=-1, keepdims=True)) + 1e-8
        x = x / norm
    o_ref[...] = x


def _finalize_kernel(x_ref, o_ref, *, seq_len, txtnorm):
    x = x_ref[:, :seq_len, :].astype(jnp.float32)
    if txtnorm:
        norm = jnp.sqrt(jnp.sum(x * x, axis=-1, keepdims=True)) + 1e-8
        x = x / norm
    o_ref[...] = x


def finalize_bi_pallas(out_f, out_b, seq_len, txtnorm):
    B, L_pad, H = out_f.shape
    bt = _divisor_leq(B, 8)
    return pl.pallas_call(
        functools.partial(_finalize_bi_kernel, seq_len=seq_len, txtnorm=txtnorm),
        out_shape=jax.ShapeDtypeStruct((B, seq_len, H), jnp.float32),
        grid=(B // bt,),
        in_specs=[pl.BlockSpec((bt, L_pad, H), lambda b: (b, 0, 0)),
                  pl.BlockSpec((bt, L_pad, H), lambda b: (b, 0, 0))],
        out_specs=pl.BlockSpec((bt, seq_len, H), lambda b: (b, 0, 0)),
        compiler_params=pltpu.CompilerParams(
            dimension_semantics=("parallel",)),
    )(out_f, out_b)


def finalize_pallas(out, seq_len, txtnorm):
    B, L_pad, H = out.shape
    bt = _divisor_leq(B, 8)
    return pl.pallas_call(
        functools.partial(_finalize_kernel, seq_len=seq_len, txtnorm=txtnorm),
        out_shape=jax.ShapeDtypeStruct((B, seq_len, H), jnp.float32),
        grid=(B // bt,),
        in_specs=[pl.BlockSpec((bt, L_pad, H), lambda b: (b, 0, 0))],
        out_specs=pl.BlockSpec((bt, seq_len, H), lambda b: (b, 0, 0)),
        compiler_params=pltpu.CompilerParams(
            dimension_semantics=("parallel",)),
    )(out)


# ------------------------------- encoder wrapper ------------------------------
class EncoderTextPallas:
    def __init__(self, vocab_size, word_dim, embed_size, num_layers,
                 use_bi_gru=False, no_txtnorm=False, seed=0):
        self.embed_size = embed_size
        self.no_txtnorm = no_txtnorm
        self.use_bi_gru = use_bi_gru
        self.num_layers = num_layers
        num_dirs = 2 if use_bi_gru else 1

        key = jax.random.PRNGKey(seed)
        key, k_emb = jax.random.split(key)
        # nn.Embedding + init_weights(): uniform(-0.1, 0.1)
        self.embed_w = jax.random.uniform(
            k_emb, (vocab_size, word_dim), jnp.float32, -0.1, 0.1)

        # nn.GRU default init: uniform(-1/sqrt(H), 1/sqrt(H)).
        # Weights stored PRE-TRANSPOSED and in bf16 for the MXU:
        #   w_ih_t (in_dim, 3H) bf16, w_hh_t (H, 3H) bf16, biases (1, 3H) f32.
        k = 1.0 / math.sqrt(embed_size)
        self.gru_params = []   # [layer][direction] -> (w_ih_t, w_hh_t, b_ih, b_hh)
        for layer in range(num_layers):
            in_dim = word_dim if layer == 0 else embed_size * num_dirs
            dirs = []
            for _ in range(num_dirs):
                key, k1, k2, k3, k4 = jax.random.split(key, 5)
                dirs.append((
                    jax.random.uniform(k1, (in_dim, 3 * embed_size),
                                       jnp.float32, -k, k).astype(jnp.bfloat16),
                    jax.random.uniform(k2, (embed_size, 3 * embed_size),
                                       jnp.float32, -k, k).astype(jnp.bfloat16),
                    jax.random.uniform(k3, (1, 3 * embed_size),
                                       jnp.float32, -k, k),
                    jax.random.uniform(k4, (1, 3 * embed_size),
                                       jnp.float32, -k, k),
                ))
            self.gru_params.append(dirs)

    def __call__(self, captions, lengths):
        """captions: (B, L) int32, lengths: (B,) int32 -> (B, L, embed_size)."""
        B, L = captions.shape
        lengths = jnp.asarray(lengths, jnp.int32)
        L_pad = ((L + T_BLOCK - 1) // T_BLOCK) * T_BLOCK

        x = self.embed_w[captions]                         # (B, L, D) gather
        # TODO(synk): nn.Dropout(0.4) treated as identity (eval/inference mode).
        if L_pad > L:
            x = jnp.pad(x, ((0, 0), (0, L_pad - L), (0, 0)))
        lengths2d = lengths.reshape(B, 1)

        out_f = out_b = out = None
        for li, layer_params in enumerate(self.gru_params):
            x2d = x.reshape(B * L_pad, x.shape[-1])
            if self.use_bi_gru:
                wf_ih, wf_hh, bf_ih, bf_hh = layer_params[0]
                wb_ih, wb_hh, bb_ih, bb_hh = layer_params[1]
                gi_f2d, gi_b2d = gi_bidir_pallas(x2d, wf_ih, bf_ih, wb_ih, bb_ih)
                G = gi_f2d.shape[-1]
                gi_f = gi_f2d.reshape(B, L_pad, G)
                gi_b = gi_b2d.reshape(B, L_pad, G)
                out_f, out_b = gru_bidir_scan_pallas(
                    gi_f, gi_b, lengths2d, wf_hh, bf_hh, wb_hh, bb_hh)
                if li + 1 < self.num_layers:
                    x = jnp.concatenate([out_f, out_b], axis=-1)
            else:
                w_ih, w_hh, b_ih, b_hh = layer_params[0]
                gi = gi_pallas(x2d, w_ih, b_ih).reshape(B, L_pad, -1)
                out = gru_scan_pallas(gi, lengths2d, w_hh, b_hh, reverse=False)
                x = out

        txtnorm = not self.no_txtnorm
        if self.use_bi_gru:
            return finalize_bi_pallas(out_f, out_b, L, txtnorm)
        return finalize_pallas(out, L, txtnorm)


# --------------------------- pure-JAX reference (check) -----------------------
def reverse_within_length(x, lengths):
    L = x.shape[1]
    t = jnp.arange(L)[None, :]
    Lb = lengths[:, None]
    idx = jnp.where(t < Lb, Lb - 1 - t, t)
    return jnp.take_along_axis(x, idx[:, :, None], axis=1)


def _ref_gru_layer(x, mask, w_ih_t, w_hh_t, b_ih, b_hh):
    B, L, _ = x.shape
    H = w_hh_t.shape[0]
    h = jnp.zeros((B, H), jnp.float32)
    outs = []
    for t in range(L):
        xt, m = x[:, t], mask[:, t:t + 1]
        gi = xt @ w_ih_t + b_ih
        gh = h @ w_hh_t + b_hh
        r = jax.nn.sigmoid(gi[:, :H] + gh[:, :H])
        z = jax.nn.sigmoid(gi[:, H:2 * H] + gh[:, H:2 * H])
        n = jnp.tanh(gi[:, 2 * H:] + r * gh[:, 2 * H:])
        h_new = (1.0 - z) * n + z * h
        h = jnp.where(m > 0, h_new, h)
        outs.append(h_new * m)
    return jnp.stack(outs, axis=1)


def _ref_forward(enc, captions, lengths):
    B, L = captions.shape
    x = enc.embed_w[captions]
    mask = (jnp.arange(L)[None, :] < lengths[:, None]).astype(jnp.float32)
    for layer_params in enc.gru_params:
        outs = []
        for d, params in enumerate(layer_params):
            w_ih_t, w_hh_t, b_ih, b_hh = [p.astype(jnp.float32) for p in params]
            if d == 0:
                out = _ref_gru_layer(x, mask, w_ih_t, w_hh_t, b_ih, b_hh)
            else:
                x_rev = reverse_within_length(x, lengths)
                out = reverse_within_length(
                    _ref_gru_layer(x_rev, mask, w_ih_t, w_hh_t, b_ih, b_hh),
                    lengths) * mask[:, :, None]
            outs.append(out)
        x = jnp.concatenate(outs, axis=-1) if len(outs) == 2 else outs[0]
    if enc.use_bi_gru:
        H = x.shape[-1] // 2
        x = (x[:, :, :H] + x[:, :, H:]) / 2
    if not enc.no_txtnorm:
        norm = jnp.sqrt(jnp.sum(x * x, axis=-1, keepdims=True)) + 1e-8
        x = x / norm
    return x


# -------------------------------------- main ----------------------------------
if __name__ == "__main__":
    vocab_size, word_dim, embed_size, num_layers = 20, 32, 32, 1
    B, L = 2, 8

    key = jax.random.PRNGKey(0)
    captions = jax.random.randint(key, (B, L), 0, vocab_size, dtype=jnp.int32)
    lengths = jnp.array([8, 5], dtype=jnp.int32)

    # Bi-GRU path (production configuration).
    enc = EncoderTextPallas(vocab_size, word_dim, embed_size, num_layers,
                            use_bi_gru=True, no_txtnorm=False, seed=0)
    out = jax.block_until_ready(enc(captions, lengths))
    ref = _ref_forward(enc, captions, lengths)
    np.testing.assert_allclose(np.asarray(out), np.asarray(ref),
                               rtol=3e-2, atol=3e-2)
    assert out.shape == (B, L, embed_size)

    # Unidirectional GRU path.
    enc1 = EncoderTextPallas(vocab_size, word_dim, embed_size, num_layers,
                             use_bi_gru=False, no_txtnorm=False, seed=1)
    out1 = jax.block_until_ready(enc1(captions, lengths))
    ref1 = _ref_forward(enc1, captions, lengths)
    np.testing.assert_allclose(np.asarray(out1), np.asarray(ref1),
                               rtol=3e-2, atol=3e-2)
    assert out1.shape == (B, L, embed_size)

    print("KERNEL_OK")
</pallas_src>

<mosaic_0001>
module attributes {stable_mosaic.version = 11 : i64} {
  func.func @_gi_bidir_kernel(%arg0: i32, %arg1: memref<16x32xf32, #tpu.memory_space<vmem>>, %arg2: memref<32x96xbf16, #tpu.memory_space<vmem>>, %arg3: memref<1x96xf32, #tpu.memory_space<vmem>>, %arg4: memref<32x96xbf16, #tpu.memory_space<vmem>>, %arg5: memref<1x96xf32, #tpu.memory_space<vmem>>, %arg6: memref<16x96xbf16, #tpu.memory_space<vmem>>, %arg7: memref<16x96xbf16, #tpu.memory_space<vmem>>) attributes {dimension_semantics = [#tpu.dimension_semantics<parallel>], iteration_bounds = array<i64: 1>, scalar_prefetch = 0 : i64, scratch_operands = 0 : i64, tpu.core_type = #tpu.core_type<tc>, window_params = [{transform_indices = @transform_0, window_bounds = array<i64: 16, 32>}, {pipeline_mode = #tpu.pipeline_mode<synchronous>, transform_indices = @transform_1, window_bounds = array<i64: 32, 96>}, {pipeline_mode = #tpu.pipeline_mode<synchronous>, transform_indices = @transform_2, window_bounds = array<i64: 1, 96>}, {pipeline_mode = #tpu.pipeline_mode<synchronous>, transform_indices = @transform_3, window_bounds = array<i64: 32, 96>}, {pipeline_mode = #tpu.pipeline_mode<synchronous>, transform_indices = @transform_4, window_bounds = array<i64: 1, 96>}, {transform_indices = @transform_5, window_bounds = array<i64: 16, 96>}, {transform_indices = @transform_6, window_bounds = array<i64: 16, 96>}]} {
    %c0 = arith.constant 0 : index
    %c0_0 = arith.constant 0 : index
    %0 = vector.load %arg1[%c0, %c0_0] : memref<16x32xf32, #tpu.memory_space<vmem>>, vector<16x32xf32>
    %1 = arith.truncf %0 : vector<16x32xf32> to vector<16x32xbf16>
    %c0_1 = arith.constant 0 : index
    %c0_2 = arith.constant 0 : index
    %2 = vector.load %arg2[%c0_1, %c0_2] : memref<32x96xbf16, #tpu.memory_space<vmem>>, vector<32x96xbf16>
    %cst = arith.constant dense<0.000000e+00> : vector<16x96xf32>
    %3 = tpu.matmul %1, %2, %cst {dimension_numbers = #tpu.dot_dimension_numbers<[1], [0], [0], [1], [0, 0, 1, 1], [], []>} : vector<16x32xbf16>, vector<32x96xbf16>, vector<16x96xf32> -> vector<16x96xf32>
    %c0_3 = arith.constant 0 : index
    %c0_4 = arith.constant 0 : index
    %4 = vector.load %arg3[%c0_3, %c0_4] : memref<1x96xf32, #tpu.memory_space<vmem>>, vector<1x96xf32>
    %5 = vector.broadcast %4 : vector<1x96xf32> to vector<16x96xf32>
    %6 = arith.addf %3, %5 : vector<16x96xf32>
    %7 = arith.truncf %6 : vector<16x96xf32> to vector<16x96xbf16>
    %c0_5 = arith.constant 0 : index
    %c0_6 = arith.constant 0 : index
    %8 = vector.load %arg6[%c0_5, %c0_6] : memref<16x96xbf16, #tpu.memory_space<vmem>>, vector<16x96xbf16>
    tpu.vector_store %arg6[%c0_5, %c0_6], %7 {strides = array<i32>} : memref<16x96xbf16, #tpu.memory_space<vmem>>, vector<16x96xbf16>,
    %c0_7 = arith.constant 0 : index
    %c0_8 = arith.constant 0 : index
    %9 = vector.load %arg4[%c0_7, %c0_8] : memref<32x96xbf16, #tpu.memory_space<vmem>>, vector<32x96xbf16>
    %cst_9 = arith.constant dense<0.000000e+00> : vector<16x96xf32>
    %10 = tpu.matmul %1, %9, %cst_9 {dimension_numbers = #tpu.dot_dimension_numbers<[1], [0], [0], [1], [0, 0, 1, 1], [], []>} : vector<16x32xbf16>, vector<32x96xbf16>, vector<16x96xf32> -> vector<16x96xf32>
    %c0_10 = arith.constant 0 : index
    %c0_11 = arith.constant 0 : index
    %11 = vector.load %arg5[%c0_10, %c0_11] : memref<1x96xf32, #tpu.memory_space<vmem>>, vector<1x96xf32>
    %12 = vector.broadcast %11 : vector<1x96xf32> to vector<16x96xf32>
    %13 = arith.addf %10, %12 : vector<16x96xf32>
    %14 = arith.truncf %13 : vector<16x96xf32> to vector<16x96xbf16>
    %c0_12 = arith.constant 0 : index
    %c0_13 = arith.constant 0 : index
    %15 = vector.load %arg7[%c0_12, %c0_13] : memref<16x96xbf16, #tpu.memory_space<vmem>>, vector<16x96xbf16>
    tpu.vector_store %arg7[%c0_12, %c0_13], %14 {strides = array<i32>} : memref<16x96xbf16, #tpu.memory_space<vmem>>, vector<16x96xbf16>,
    return
  }
  func.func @transform_0(%arg0: i32) -> (i32, i32) {
    %c0_i32 = arith.constant 0 : i32
    %c0_i32_0 = arith.constant 0 : i32
    return %arg0, %c0_i32 : i32, i32
  }
  func.func @transform_1(%arg0: i32) -> (i32, i32) {
    %c0_i32 = arith.constant 0 : i32
    %c0_i32_0 = arith.constant 0 : i32
    %c0_i32_1 = arith.constant 0 : i32
    return %c0_i32, %c0_i32_0 : i32, i32
  }
  func.func @transform_2(%arg0: i32) -> (i32, i32) {
    %c0_i32 = arith.constant 0 : i32
    %c0_i32_0 = arith.constant 0 : i32
    %c0_i32_1 = arith.constant 0 : i32
    return %c0_i32, %c0_i32_0 : i32, i32
  }
  func.func @transform_3(%arg0: i32) -> (i32, i32) {
    %c0_i32 = arith.constant 0 : i32
    %c0_i32_0 = arith.constant 0 : i32
    %c0_i32_1 = arith.constant 0 : i32
    return %c0_i32, %c0_i32_0 : i32, i32
  }
  func.func @transform_4(%arg0: i32) -> (i32, i32) {
    %c0_i32 = arith.constant 0 : i32
    %c0_i32_0 = arith.constant 0 : i32
    %c0_i32_1 = arith.constant 0 : i32
    return %c0_i32, %c0_i32_0 : i32, i32
  }
  func.func @transform_5(%arg0: i32) -> (i32, i32) {
    %c0_i32 = arith.constant 0 : i32
    %c0_i32_0 = arith.constant 0 : i32
    return %arg0, %c0_i32 : i32, i32
  }
  func.func @transform_6(%arg0: i32) -> (i32, i32) {
    %c0_i32 = arith.constant 0 : i32
    %c0_i32_0 = arith.constant 0 : i32
    return %arg0, %c0_i32 : i32, i32
  }
}

</mosaic_0001>

<bundles_post_ra>
// kernel: tpu_custom_call.1
= control target key start
LH: loop header
LB: loop body
LE: loop exit
PB: predicated region body
PF: predicated region fallthrough
CT: control target
= control target key end

     0   :  { %12 = vsyncpa [#allocation3], 0  ;;  %s562_s0 = inlined_call_operand.hbm [shape: f32[16,32], index: 0, kind: input, shape index: {}]   ;;  %s563_s1 = inlined_call_operand.hbm [shape: bf16[32,96], index: 1, kind: input, shape index: {}]   ;;  %s564_s2 = inlined_call_operand.vmem [shape: f32[1,96], index: 2, kind: input, shape index: {}]   ;;  %s565_s3 = inlined_call_operand.hbm [shape: bf16[32,96], index: 3, kind: input, shape index: {}]   ;;  %s566_s4 = inlined_call_operand.vmem [shape: f32[1,96], index: 4, kind: input, shape index: {}]   ;;  %s567_s5 = inlined_call_operand.hbm [shape: bf16[16,96], index: 5, kind: output, shape index: {0}]   ;;  %s568_s6 = inlined_call_operand.hbm [shape: bf16[16,96], index: 6, kind: output, shape index: {1}]  }
   0x1   :  { %13 = vsyncpa [#allocation6], 0 }
   0x2   :  { %14 = vsyncpa [#allocation4], 0 }
   0x3   :  { %15 = vsyncpa [#allocation10], 0  ;;  %s427_s21 = smov [#allocation5]   ;;  %s309_s25 = scalar_lea.hbm %s563_s1, 256 }
   0x4   :  { %s33_s22 = sshll.u32 %s427_s21, 4  ;;  %p310_p0 = scmp.ne.s32.totalorder %s563_s1, %s309_s25  ;;  %s34_s22 = int_to_ptr.vmem [resolvable:$true] %s33_s22 }
   0x5   :  { %p313_p1 = scmp.lt.u32.totalorder %s309_s25, %s563_s1 }
   0x7   :  { %p315_p2 = pnand %p313_p1, %p310_p0 }
   0x9   :  { %318 = shalt.err (!%p315_p2)
}
   0xa   :  { %s319_s30 = scalar_lea.vmem %s34_s22, 256  ;;  %p324_p4 = scmp.lt.s32.totalorder %s34_s22, %s34_s22 }
   0xb   :  { %p320_p3 = scmp.ne.s32.totalorder %s34_s22, %s319_s30  ;;  %p325_p5 = scmp.lt.s32.totalorder %s319_s30, %s319_s30 }
   0xd   :  { %p326_p6 = por %p325_p5, %p324_p4 }
   0xf   :  { %p327_p7 = pnand %p326_p6, %p320_p3 }
  0x11   :  { %330 = shalt.err (!%p327_p7)
}
  0x12   :  { %s428_s7 = smov 64   ;;  %s429_s8 = smov 4  }
  0x13   :  { %39 = dma.hbm_to_vmem [thread:$0]  %s563_s1, 256, %s34_s22, [#allocation6], %s428_s7, %s428_s7, %s429_s8  }
  0x14   :  { %s430_s11 = smov [#allocation2]   ;;  %s331_s15 = scalar_lea.hbm %s562_s0, 256 }
  0x15   :  { %s21_s12 = sshll.u32 %s430_s11, 4  ;;  %p332_p8 = scmp.ne.s32.totalorder %s562_s0, %s331_s15  ;;  %s22_s12 = int_to_ptr.vmem [resolvable:$true] %s21_s12 }
  0x16   :  { %p335_p9 = scmp.lt.u32.totalorder %s331_s15, %s562_s0 }
  0x18   :  { %p337_p10 = pnand %p335_p9, %p332_p8 }
  0x1a   :  { %340 = shalt.err (!%p337_p10)
}
  0x1b   :  { %s341_s20 = scalar_lea.vmem %s22_s12, 256  ;;  %p346_p12 = scmp.lt.s32.totalorder %s22_s12, %s22_s12 }
  0x1c   :  { %p342_p11 = scmp.ne.s32.totalorder %s22_s12, %s341_s20  ;;  %p347_p13 = scmp.lt.s32.totalorder %s341_s20, %s341_s20 }
  0x1e   :  { %p348_p0 = por %p347_p13, %p346_p12 }
  0x20   :  { %p349_p1 = pnand %p348_p0, %p342_p11 }
  0x22   :  { %352 = shalt.err (!%p349_p1)
}
  0x23   :  { %s431_s1 = smov 128   ;;  %s432_s21 = smov 8  }
  0x24   :  { %27 = dma.hbm_to_vmem [thread:$0]  %s562_s0, 256, %s22_s12, [#allocation3], %s431_s1, %s431_s1, %s432_s21  }
  0x25   :  { %s433_s24 = smov [#allocation7]   ;;  %s353_s28 = scalar_lea.hbm %s565_s3, 256 }
  0x26   :  { %s47_s25 = sshll.u32 %s433_s24, 4  ;;  %p354_p2 = scmp.ne.s32.totalorder %s565_s3, %s353_s28  ;;  %s48_s25 = int_to_ptr.vmem [resolvable:$true] %s47_s25 }
  0x27   :  { %p357_p3 = scmp.lt.u32.totalorder %s353_s28, %s565_s3 }
  0x29   :  { %p359_p4 = pnand %p357_p3, %p354_p2 }
  0x2b   :  { %362 = shalt.err (!%p359_p4)
}
  0x2c   :  { %s363_s11 = scalar_lea.vmem %s48_s25, 256  ;;  %p368_p6 = scmp.lt.s32.totalorder %s48_s25, %s48_s25 }
  0x2d   :  { %p364_p5 = scmp.ne.s32.totalorder %s48_s25, %s363_s11  ;;  %p369_p7 = scmp.lt.s32.totalorder %s363_s11, %s363_s11 }
  0x2f   :  { %p370_p8 = por %p369_p7, %p368_p6 }
  0x31   :  { %p371_p9 = pnand %p370_p8, %p364_p5 }
  0x33   :  { %374 = shalt.err (!%p371_p9)
}
  0x34   :  { %53 = dma.hbm_to_vmem [thread:$0]  %s565_s3, 256, %s48_s25, [#allocation6], %s428_s7, %s428_s7, %s429_s8  }
  0x35   :  { %419 = dma.done.wait [#allocation3], 256  }
  0x36   :  { %420 = vsyncadd [#allocation3], 4294967040 }
  0x37   :  { %421 = dma.done.wait [#allocation6], 512  }
  0x38   :  { %422 = vsyncadd [#allocation6], 4294966784  ;;  %v434_v0 = vmov 0.0   ;;  %vm435_vm0 = vmmov 0   ;;  %v305_v1 = vld [vmem:[#allocation5] sm:$0xff]   ;;  %v306_v2 = vld [vmem:[#allocation7] sm:$0xff]  }
  0x39   :  { %278 = vmatprep.subr.bf16.mxu0 %v434_v0  ;;  %286 = vmatprep.subr.bf16.mxu1 %v434_v0  ;;  %v307_v3 = vld [vmem:[#allocation5 + $0x8] sm:$0xff]   ;;  %v308_v4 = vld [vmem:[#allocation7 + $0x8] sm:$0xff]   ;;  %v66_v5 = vld [vmem:[#allocation2] sm:$0xff]  ;;  %vm92_vm1 = vcmask 261120   ;;  %vm145_vm2 = vcmask 781312   ;;  %s436_s16 = smov [#allocation8]  }
  0x3a   :  { %282 = vmatprep.mubr.msk.bf16.mxu0 %vm435_vm0, %v434_v0  ;;  %290 = vmatprep.mubr.msk.bf16.mxu1 %vm435_vm0, %v434_v0  ;;  %v67_v6 = vld [vmem:[#allocation2 + $0x8] sm:$0xff]  ;;  %v256_v8 = vld [vmem:[%s564_s2] ss:$0 sm:$0xff]  ;;  %s227_s17 = sshll.u32 %s436_s16, 4  ;;  %s437_s18 = smov [#allocation9]   ;;  %s228_s17 = int_to_ptr.vmem [resolvable:$true] %s227_s17 }
  0x3b   :  { %279 = vmatpush3.bf16.msra.mxu0 %v305_v1  ;;  %287 = vmatpush3.bf16.msra.mxu1 %v306_v2  ;;  %v68_v7 = vpack.c.bf16 %v67_v6, %v66_v5  ;;  %v262_v9 = vld [vmem:[%s566_s4] ss:$0 sm:$0xff]  ;;  %s239_s2 = sshll.u32 %s437_s18, 4  ;;  %s375_s4 = scalar_lea.vmem %s228_s17, 128  ;;  %s523_s2 = int_to_ptr.vmem [resolvable:$true] %s239_s2 }
  0x3c   :  { %280 = vmatprep.subr.bf16.mxu0 %v434_v0  ;;  %288 = vmatprep.subr.bf16.mxu1 %v434_v0  ;;  %p376_p10 = scmp.ne.s32.totalorder %s228_s17, %s375_s4  ;;  %p380_p11 = scmp.lt.s32.totalorder %s228_s17, %s228_s17 }
  0x3d   :  { %p381_p12 = scmp.lt.s32.totalorder %s375_s4, %s375_s4 }
  0x3f   :  { %281 = vmatpush3.bf16.msra.mxu0 %v307_v3  ;;  %289 = vmatpush3.bf16.msra.mxu1 %v308_v4  ;;  %p382_p13 = por %p381_p12, %p380_p11 }
  0x41   :  { %p383_p0 = pnand %p382_p13, %p376_p10 }
  0x42   :  { %283 = vmatmul.mubr.msk.bf16.vlgmr.msra.gmra.mrb[0].mxu0 %vm92_vm1, %v68_v7  ;;  %291 = vmatmul.mubr.msk.bf16.vlgmr.msra.gmra.mrb[0].mxu1 %vm92_vm1, %v68_v7 }
 0x115   :  { %v130_v10 = vpop.f32.mrb[0].mxu0  ;;  %v205_v12 = vpop.f32.mrb[0].mxu1 }
 0x116   :  { %v131_v11 = vadd.f32 %v256_v8, %v130_v10  ;;  %v284_v13 = vpop.f32.mrb[1].mxu0  ;;  %v206_v14 = vadd.f32 %v262_v9, %v205_v12  ;;  %v292_v15 = vpop.f32.mrb[1].mxu1 }
 0x117   :  { %v133_v16 = vpop.f32.mrb[2].mxu0  ;;  %v208_v19 = vpop.f32.mrb[2].mxu1 }
 0x118   :  { %v268_v17 = vpack.c.bf16 %v131_v11, %v131_v11  ;;  %v134_v18 = vadd.f32 %v256_v8, %v133_v16  ;;  %v285_v20 = vpop.f32.mrb[3].mxu0  ;;  %v270_v21 = vpack.c.bf16 %v206_v14, %v206_v14  ;;  %v209_v22 = vadd.f32 %v262_v9, %v208_v19  ;;  %v293_v23 = vpop.f32.mrb[3].mxu1 }
 0x11a   :  { %v269_v24 = vpack.c.bf16 %v134_v18, %v134_v18  ;;  %146 = vst.msk [vmem:[#allocation8] sm:$0xf] %vm145_vm2, %v268_v17  ;;  %v271_v25 = vpack.c.bf16 %v209_v22, %v209_v22  ;;  %220 = vst.msk [vmem:[#allocation9] sm:$0xf] %vm145_vm2, %v270_v21 }
 0x11c   :  { %147 = vst.msk [vmem:[#allocation8 + $0x4] sm:$0xf] %vm145_vm2, %v269_v24 }
 0x11d   :  { %386 = shalt.err (!%p383_p0)
}
 0x11e   :  { %s387_s1 = scalar_lea.hbm %s567_s5, 128 }
 0x11f   :  { %p388_p1 = scmp.ne.s32.totalorder %s567_s5, %s387_s1  ;;  %p391_p2 = scmp.lt.u32.totalorder %s387_s1, %s567_s5 }
 0x121   :  { %p393_p3 = pnand %p391_p2, %p388_p1 }
 0x123   :  { %396 = shalt.err (!%p393_p3)
}
 0x124   :  { %233 = dma.vmem_to_hbm [thread:$0]  %s228_s17, 128, %s567_s5, [#allocation4], %s428_s7, %s428_s7, %s429_s8   ;;  %221 = vst.msk [vmem:[#allocation9 + $0x4] sm:$0xf] %vm145_vm2, %v271_v25 }
 0x125   :  { %s397_s27 = scalar_lea.vmem %s523_s2, 128  ;;  %p402_p5 = scmp.lt.s32.totalorder %s523_s2, %s523_s2 }
 0x126   :  { %p398_p4 = scmp.ne.s32.totalorder %s523_s2, %s397_s27  ;;  %p403_p6 = scmp.lt.s32.totalorder %s397_s27, %s397_s27 }
 0x128   :  { %p404_p7 = por %p403_p6, %p402_p5 }
 0x12a   :  { %p405_p8 = pnand %p404_p7, %p398_p4 }
 0x12c   :  { %408 = shalt.err (!%p405_p8)
}
 0x12d   :  { %s409_s30 = scalar_lea.hbm %s568_s6, 128 }
 0x12e   :  { %p410_p9 = scmp.ne.s32.totalorder %s568_s6, %s409_s30  ;;  %p413_p10 = scmp.lt.u32.totalorder %s409_s30, %s568_s6 }
 0x130   :  { %p415_p11 = pnand %p413_p10, %p410_p9 }
 0x132   :  { %418 = shalt.err (!%p415_p11)
}
 0x133   :  { %245 = dma.vmem_to_hbm [thread:$0]  %s523_s2, 128, %s568_s6, [#allocation10], %s428_s7, %s428_s7, %s429_s8  }
 0x134   :  { %423 = dma.done.wait [#allocation4], 128  }
 0x135   :  { %424 = vsyncadd [#allocation4], 4294967168 }
 0x136   :  { %425 = dma.done.wait [#allocation10], 128  }
 0x137   :  { %426 = vsyncadd [#allocation10], 4294967168 }
 0x138   :  { %252 = vsyncpa [#allocation3], 1 }
 0x139   :  { %253 = vsyncpa [#allocation6], 1 }
 0x13a   :  { %254 = vsyncpa [#allocation4], 1 }
 0x13b   :  { %255 = vsyncpa [#allocation10], 1 }

</bundles_post_ra>
